<compile_context>
chip_gen: v5e
topology: v5e:2x2
jax: 0.10.0
libtpu: 0.0.40
codegen_flags: <defaults>
</compile_context>

<pallas_src>
import functools

import jax
import jax.numpy as jnp
from jax import lax
from jax.experimental import pallas as pl
from jax.experimental.pallas import tpu as pltpu


def _scalar_to_vreg(s):
    """Place scalar `s` at element [0, 0] of an (8, 128) f32 tile (rest zero)."""
    m = ((lax.broadcasted_iota(jnp.int32, (8, 128), 0) == 0) &
         (lax.broadcasted_iota(jnp.int32, (8, 128), 1) == 0))
    return jnp.where(m, s, jnp.float32(0.0))


def _fold_to_vreg_and_tail(a2):
    """Fold a 2-D f32 array into an (8, 128) partial-sum tile plus scalar tail.

    For (8k, c>=128) tiles the fold is tile-aligned sublane-group adds plus
    vreg-aligned 128-lane column-group adds (pure VPU); only the final
    c % 128 tail columns (one partial vreg) go through a scalar reduce.
    Tiny / ragged tiles fall back to a scalar reduce entirely.
    """
    r, c = a2.shape
    if r % 8 != 0 or c < 128:
        return jnp.zeros((8, 128), jnp.float32), jnp.sum(a2)
    t = a2 if r == 8 else jnp.sum(a2.reshape(r // 8, 8, c), axis=0)   # (8, c)
    ngroups = c // 128
    acc = t[:, 0:128]
    for g in range(1, ngroups):                      # vreg-aligned lane groups
        acc = acc + t[:, g * 128:(g + 1) * 128]
    tail = c - ngroups * 128
    tail_sum = jnp.sum(t[:, ngroups * 128:]) if tail else jnp.float32(0.0)
    return acc, tail_sum


def _capsule_loss_kernel(x_ref, labels_ref, sel_ref, img_ref, rec_ref,
                         out_ref, *, learning_rate):
    f32 = jnp.float32
    x = x_ref[...].astype(f32)             # (TB, NC*CD) lane-dense
    labels = labels_ref[...].astype(f32)   # (TB, NC)
    diff = rec_ref[...].astype(f32) - img_ref[...].astype(f32)      # (TB, D)

    # ---- reconstruction loss partial: sum((rec - img)^2) -------------------
    recon_fold, recon_tail = _fold_to_vreg_and_tail(diff * diff)

    # ---- margin loss partial: per-capsule squared norms via MXU ------------
    # (TB, NC*CD) @ (NC*CD, NC) with a resident 0/1 block-diagonal selector.
    v2 = jnp.dot(x * x, sel_ref[...], preferred_element_type=f32)   # (TB, NC)
    v_c = jnp.sqrt(v2)
    left = jnp.maximum(0.9 - v_c, 0.0)                              # relu(0.9 - v_c)
    right = jnp.maximum(v_c - 0.1, 0.0)                             # relu(v_c - 0.1)
    margin = jnp.sum(labels * left + 0.5 * (1.0 - labels) * right)  # tiny scalar

    scalar_part = margin + learning_rate * recon_tail
    out_ref[0] = learning_rate * recon_fold + _scalar_to_vreg(scalar_part)


def _vmem_capacity_bytes():
    try:
        info = pltpu.get_tpu_info()
        cap = getattr(info, "vmem_capacity_bytes", None)
        if cap:
            return int(cap)
    except Exception:
        pass
    return 64 * 1024 * 1024        # conservative: v7x per-TensorCore VMEM


def _pick_batch_tile(batch, per_row_bytes, budget_bytes):
    """Rows per batch tile.

    Prefers (a) the full batch for tiny batches, (b) the largest multiple-of-8
    divisor of `batch` that fits the VMEM budget (no padding / masking) while
    keeping >= 2 grid blocks so the parallel batch axis can shard across
    TensorCores, otherwise (c) the largest multiple of 8 that fits (the
    wrapper zero-pads the batch in that case).
    """
    if batch <= 8:
        return batch                                     # full-dim block is legal
    max_rows = max(8, int(budget_bytes // max(per_row_bytes, 1)) // 8 * 8)
    if batch % 8 != 0 and batch < 16 and batch <= max_rows:
        return batch                                     # single full-dim block
    if batch >= 16:                                      # keep >= 2 grid blocks
        max_rows = min(max_rows, max(8, (batch // 2) // 8 * 8))
    max_rows = min(max_rows, max(8, (batch // 8) * 8))
    for rows in range(max_rows, 7, -8):                  # divisor of batch -> no pad
        if batch % rows == 0:
            return rows
    return max_rows


def capsule_loss(x, labels, images, reconstructions, learning_rate=0.0005, *,
                 batch_tile=None):
    """Pallas implementation of CapsuleLoss.forward.

    x:                (B, NUM_CAPS, CAPS_DIM)
    labels:           (B, NUM_CAPS)
    images:           (B, C, H, W)  (flattened like images.view(B, -1))
    reconstructions:  (B, C*H*W)
    returns scalar float32 loss.
    """
    b, num_caps, caps_dim = x.shape
    ncd = num_caps * caps_dim
    x_flat = x.reshape(b, ncd)                                  # lane-dense
    images_flat = images.reshape(reconstructions.shape[0], -1)
    recon = reconstructions
    d = images_flat.shape[1]
    batch = images_flat.shape[0]
    nc = labels.shape[1]

    # VMEM budget: both D-wide streams double-buffered + x/labels streams +
    # in-kernel f32 temporaries, counted per tile row.
    per_row = (2 * (d * (images_flat.dtype.itemsize + recon.dtype.itemsize)
                    + ncd * x_flat.dtype.itemsize + nc * labels.dtype.itemsize)
               + 3 * d * 4 + 2 * ncd * 4)
    vmem_cap = _vmem_capacity_bytes()
    vmem_limit = int(min(vmem_cap * 0.6, 80 * 1024 * 1024))    # ~38 MiB on v7x, ~77 MiB on v5e/v6e
    budget = int(vmem_limit * 0.8)

    if batch_tile is not None:
        tb = int(batch_tile)
        assert tb == batch or tb % 8 == 0, (
            "batch tile must be a multiple of 8 or the full batch")
    else:
        tb = _pick_batch_tile(batch, per_row, budget)

    pad = 0 if tb == batch else (-batch) % tb
    if pad:
        # Zero rows contribute exactly 0 to both loss terms (labels == 0 kills
        # the margin term; rec == img == 0 kills the reconstruction term).
        x_flat = jnp.pad(x_flat, ((0, pad), (0, 0)))
        labels = jnp.pad(labels, ((0, pad), (0, 0)))
        images_flat = jnp.pad(images_flat, ((0, pad), (0, 0)))
        recon = jnp.pad(recon, ((0, pad), (0, 0)))
    padded_batch = batch + pad
    num_blocks = padded_batch // tb

    # 0/1 block-diagonal capsule selector, built once and DMA'd once (constant
    # index map) so it stays resident in VMEM across the whole grid.
    sel = (jnp.arange(ncd, dtype=jnp.int32)[:, None] // caps_dim ==
           jnp.arange(num_caps, dtype=jnp.int32)[None, :]).astype(jnp.float32)

    kernel = functools.partial(_capsule_loss_kernel,
                               learning_rate=float(learning_rate))

    flops = int(3 * padded_batch * d + 2 * padded_batch * ncd * nc
                + 8 * padded_batch * nc)
    bytes_accessed = int(
        images_flat.size * images_flat.dtype.itemsize
        + recon.size * recon.dtype.itemsize
        + x_flat.size * x_flat.dtype.itemsize
        + labels.size * labels.dtype.itemsize
        + sel.size * 4 + num_blocks * 8 * 128 * 4)

    # TODO(synk): optionally sweep pipeline_mode=pl.Buffered(3) on the two
    # D-wide streams on v7x once the tile size is fixed for a given model.
    partials = pl.pallas_call(
        kernel,
        grid=(num_blocks,),
        out_shape=jax.ShapeDtypeStruct((num_blocks, 8, 128), jnp.float32),
        in_specs=[
            pl.BlockSpec((tb, ncd), lambda i: (i, 0)),        # x (flat)
            pl.BlockSpec((tb, nc), lambda i: (i, 0)),         # labels
            pl.BlockSpec((ncd, nc), lambda i: (0, 0)),        # selector (resident)
            pl.BlockSpec((tb, d), lambda i: (i, 0)),          # images (flat)
            pl.BlockSpec((tb, d), lambda i: (i, 0)),          # reconstructions
        ],
        out_specs=pl.BlockSpec((1, 8, 128), lambda i: (i, 0, 0)),
        compiler_params=pltpu.CompilerParams(
            dimension_semantics=("parallel",),
            vmem_limit_bytes=vmem_limit,
        ),
        cost_estimate=pl.CostEstimate(
            flops=flops,
            transcendentals=int(padded_batch * nc),
            bytes_accessed=bytes_accessed,
        ),
    )(x_flat, labels, sel, images_flat, recon)

    # Final tiny reduction + divide by the ORIGINAL batch in plain JAX.
    return jnp.sum(partials) / jnp.float32(batch)


def _reference_loss(x, labels, images, reconstructions, learning_rate=0.0005):
    # Pure-JAX reference mirroring the PyTorch forward (computed in f32).
    b = x.shape[0]
    xf = x.astype(jnp.float32)
    lf = labels.astype(jnp.float32)
    imf = images.reshape(reconstructions.shape[0], -1).astype(jnp.float32)
    rf = reconstructions.astype(jnp.float32)
    v_c = jnp.sqrt(jnp.sum(xf ** 2, axis=2, keepdims=True))
    left = jax.nn.relu(0.9 - v_c).reshape(b, -1)
    right = jax.nn.relu(v_c - 0.1).reshape(b, -1)
    margin_loss = jnp.sum(lf * left + 0.5 * (1.0 - lf) * right)
    rec_loss = jnp.sum((rf - imf) ** 2)
    return (margin_loss + learning_rate * rec_loss) / imf.shape[0]


if __name__ == "__main__":
    key = jax.random.PRNGKey(0)

    def make_inputs(batch, num_caps, caps_dim, img_shape, base_key,
                    img_dtype=jnp.float32):
        k_x, k_lbl, k_img, k_rec = jax.random.split(base_key, 4)
        d = 1
        for s in img_shape:
            d *= s
        xv = jax.random.normal(k_x, (batch, num_caps, caps_dim), dtype=jnp.float32)
        label_idx = jax.random.randint(k_lbl, (batch,), 0, num_caps)
        lbl = jax.nn.one_hot(label_idx, num_caps, dtype=jnp.float32)
        img = jax.random.uniform(k_img, (batch,) + img_shape,
                                 dtype=jnp.float32).astype(img_dtype)
        rec = jax.random.uniform(k_rec, (batch, d),
                                 dtype=jnp.float32).astype(img_dtype)
        return xv, lbl, img, rec

    # (batch, NC, CD, img_shape, batch_tile, img_dtype): exercises tiny full-dim
    # block, auto-tiled multi-block, D % 128 != 0 lane-tail fold, padded
    # remainder batch, and the bf16 halved-bandwidth input path.
    cases = [
        (2,  8, 16, (4, 16, 16), None, jnp.float32),
        (16, 8, 16, (4, 16, 16), None, jnp.float32),
        (16, 10, 16, (1, 28, 28), 8, jnp.float32),
        (20, 8, 16, (4, 16, 16), 8, jnp.float32),
        (16, 8, 16, (4, 16, 16), 8, jnp.bfloat16),
    ]
    for i, (batch, nc_, cd_, ishape, tile, idt) in enumerate(cases):
        xv, lbl, img, rec = make_inputs(batch, nc_, cd_, ishape,
                                        jax.random.fold_in(key, i), idt)
        loss = jax.block_until_ready(
            capsule_loss(xv, lbl, img, rec, batch_tile=tile))
        ref = _reference_loss(xv, lbl, img, rec)
        assert jnp.allclose(loss, ref, rtol=1e-4, atol=1e-4), (
            i, batch, tile, float(loss), float(ref))

    print("KERNEL_OK")
</pallas_src>

<mosaic_0001>
module attributes {stable_mosaic.version = 11 : i64} {
  func.func @_capsule_loss_kernel(%arg0: i32, %arg1: memref<2x128xf32, #tpu.memory_space<vmem>>, %arg2: memref<2x8xf32, #tpu.memory_space<vmem>>, %arg3: memref<128x8xf32, #tpu.memory_space<vmem>>, %arg4: memref<2x1024xf32, #tpu.memory_space<vmem>>, %arg5: memref<2x1024xf32, #tpu.memory_space<vmem>>, %arg6: memref<1x8x128xf32, #tpu.memory_space<vmem>>) attributes {dimension_semantics = [#tpu.dimension_semantics<parallel>], iteration_bounds = array<i64: 1>, scalar_prefetch = 0 : i64, scratch_operands = 0 : i64, tpu.core_type = #tpu.core_type<tc>, window_params = [{transform_indices = @transform_0, window_bounds = array<i64: 2, 128>}, {transform_indices = @transform_1, window_bounds = array<i64: 2, 8>}, {pipeline_mode = #tpu.pipeline_mode<synchronous>, transform_indices = @transform_2, window_bounds = array<i64: 128, 8>}, {transform_indices = @transform_3, window_bounds = array<i64: 2, 1024>}, {transform_indices = @transform_4, window_bounds = array<i64: 2, 1024>}, {transform_indices = @transform_5, window_bounds = array<i64: 1, 8, 128>}]} {
    %c0 = arith.constant 0 : index
    %c0_0 = arith.constant 0 : index
    %0 = vector.load %arg1[%c0, %c0_0] : memref<2x128xf32, #tpu.memory_space<vmem>>, vector<2x128xf32>
    %c0_1 = arith.constant 0 : index
    %c0_2 = arith.constant 0 : index
    %1 = vector.load %arg2[%c0_1, %c0_2] : memref<2x8xf32, #tpu.memory_space<vmem>>, vector<2x8xf32>
    %c0_3 = arith.constant 0 : index
    %c0_4 = arith.constant 0 : index
    %2 = vector.load %arg5[%c0_3, %c0_4] : memref<2x1024xf32, #tpu.memory_space<vmem>>, vector<2x1024xf32>
    %c0_5 = arith.constant 0 : index
    %c0_6 = arith.constant 0 : index
    %3 = vector.load %arg4[%c0_5, %c0_6] : memref<2x1024xf32, #tpu.memory_space<vmem>>, vector<2x1024xf32>
    %4 = arith.subf %2, %3 : vector<2x1024xf32>
    %5 = arith.mulf %4, %4 : vector<2x1024xf32>
    %cst = arith.constant 0.000000e+00 : f32
    %6 = vector.broadcast %cst : f32 to vector<8x128xf32>
    %7 = vector.shape_cast %5 : vector<2x1024xf32> to vector<1x2x1024xf32>
    %cst_7 = arith.constant dense<0.000000e+00> : vector<1xf32>
    %8 = vector.multi_reduction <add>, %7, %cst_7 [1, 2] : vector<1x2x1024xf32> to vector<1xf32>
    %9 = vector.shape_cast %8 : vector<1xf32> to vector<1x1x1xf32>
    %10 = vector.extract %9[0, 0, 0] : f32 from vector<1x1x1xf32>
    %11 = arith.mulf %0, %0 : vector<2x128xf32>
    %c0_8 = arith.constant 0 : index
    %c0_9 = arith.constant 0 : index
    %12 = vector.load %arg3[%c0_8, %c0_9] : memref<128x8xf32, #tpu.memory_space<vmem>>, vector<128x8xf32>
    %cst_10 = arith.constant dense<0.000000e+00> : vector<2x8xf32>
    %13 = tpu.matmul %11, %12, %cst_10 {dimension_numbers = #tpu.dot_dimension_numbers<[1], [0], [0], [1], [0, 0, 1, 1], [], []>} : vector<2x128xf32>, vector<128x8xf32>, vector<2x8xf32> -> vector<2x8xf32>
    %14 = math.sqrt %13 : vector<2x8xf32>
    %cst_11 = arith.constant 0.899999976 : f32
    %15 = vector.broadcast %cst_11 : f32 to vector<2x8xf32>
    %16 = arith.subf %15, %14 : vector<2x8xf32>
    %cst_12 = arith.constant 0.000000e+00 : f32
    %17 = vector.broadcast %cst_12 : f32 to vector<2x8xf32>
    %18 = arith.maximumf %16, %17 : vector<2x8xf32>
    %cst_13 = arith.constant 1.000000e-01 : f32
    %19 = vector.broadcast %cst_13 : f32 to vector<2x8xf32>
    %20 = arith.subf %14, %19 : vector<2x8xf32>
    %cst_14 = arith.constant 0.000000e+00 : f32
    %21 = vector.broadcast %cst_14 : f32 to vector<2x8xf32>
    %22 = arith.maximumf %20, %21 : vector<2x8xf32>
    %23 = arith.mulf %1, %18 : vector<2x8xf32>
    %cst_15 = arith.constant 1.000000e+00 : f32
    %24 = vector.broadcast %cst_15 : f32 to vector<2x8xf32>
    %25 = arith.subf %24, %1 : vector<2x8xf32>
    %cst_16 = arith.constant 5.000000e-01 : f32
    %26 = vector.broadcast %cst_16 : f32 to vector<2x8xf32>
    %27 = arith.mulf %26, %25 : vector<2x8xf32>
    %28 = arith.mulf %27, %22 : vector<2x8xf32>
    %29 = arith.addf %23, %28 : vector<2x8xf32>
    %30 = vector.shape_cast %29 : vector<2x8xf32> to vector<1x2x8xf32>
    %cst_17 = arith.constant dense<0.000000e+00> : vector<1xf32>
    %31 = vector.multi_reduction <add>, %30, %cst_17 [1, 2] : vector<1x2x8xf32> to vector<1xf32>
    %32 = vector.shape_cast %31 : vector<1xf32> to vector<1x1x1xf32>
    %33 = vector.extract %32[0, 0, 0] : f32 from vector<1x1x1xf32>
    %cst_18 = arith.constant 5.000000e-04 : f32
    %34 = arith.mulf %cst_18, %10 : f32
    %35 = arith.addf %33, %34 : f32
    %cst_19 = arith.constant 5.000000e-04 : f32
    %36 = vector.broadcast %cst_19 : f32 to vector<8x128xf32>
    %37 = arith.mulf %36, %6 : vector<8x128xf32>
    %38 = tpu.iota {dimensions = array<i32: 0>} : vector<8x128xi32>
    %c0_i32 = arith.constant 0 : i32
    %39 = vector.broadcast %c0_i32 : i32 to vector<8x128xi32>
    %40 = arith.cmpi eq, %38, %39 : vector<8x128xi32>
    %41 = tpu.iota {dimensions = array<i32: 1>} : vector<8x128xi32>
    %c0_i32_20 = arith.constant 0 : i32
    %42 = vector.broadcast %c0_i32_20 : i32 to vector<8x128xi32>
    %43 = arith.cmpi eq, %41, %42 : vector<8x128xi32>
    %44 = arith.andi %40, %43 : vector<8x128xi1>
    %cst_21 = arith.constant 0.000000e+00 : f32
    %45 = vector.broadcast %35 : f32 to vector<8x128xf32>
    %46 = vector.broadcast %cst_21 : f32 to vector<8x128xf32>
    %47 = arith.select %44, %45, %46 : vector<8x128xi1>, vector<8x128xf32>
    %48 = arith.addf %37, %47 : vector<8x128xf32>
    %c0_22 = arith.constant 0 : index
    %c0_23 = arith.constant 0 : index
    %c0_24 = arith.constant 0 : index
    %49 = vector.load %arg6[%c0_22, %c0_23, %c0_24] : memref<1x8x128xf32, #tpu.memory_space<vmem>>, vector<1x8x128xf32>
    %50 = vector.shape_cast %49 : vector<1x8x128xf32> to vector<8x128xf32>
    %51 = vector.shape_cast %48 : vector<8x128xf32> to vector<1x8x128xf32>
    tpu.vector_store %arg6[%c0_22, %c0_23, %c0_24], %51 {strides = array<i32>} : memref<1x8x128xf32, #tpu.memory_space<vmem>>, vector<1x8x128xf32>,
    return
  }
  func.func @transform_0(%arg0: i32) -> (i32, i32) {
    %c0_i32 = arith.constant 0 : i32
    %c0_i32_0 = arith.constant 0 : i32
    return %arg0, %c0_i32 : i32, i32
  }
  func.func @transform_1(%arg0: i32) -> (i32, i32) {
    %c0_i32 = arith.constant 0 : i32
    %c0_i32_0 = arith.constant 0 : i32
    return %arg0, %c0_i32 : i32, i32
  }
  func.func @transform_2(%arg0: i32) -> (i32, i32) {
    %c0_i32 = arith.constant 0 : i32
    %c0_i32_0 = arith.constant 0 : i32
    %c0_i32_1 = arith.constant 0 : i32
    return %c0_i32, %c0_i32_0 : i32, i32
  }
  func.func @transform_3(%arg0: i32) -> (i32, i32) {
    %c0_i32 = arith.constant 0 : i32
    %c0_i32_0 = arith.constant 0 : i32
    return %arg0, %c0_i32 : i32, i32
  }
  func.func @transform_4(%arg0: i32) -> (i32, i32) {
    %c0_i32 = arith.constant 0 : i32
    %c0_i32_0 = arith.constant 0 : i32
    return %arg0, %c0_i32 : i32, i32
  }
  func.func @transform_5(%arg0: i32) -> (i32, i32, i32) {
    %c0_i32 = arith.constant 0 : i32
    %c0_i32_0 = arith.constant 0 : i32
    %c0_i32_1 = arith.constant 0 : i32
    return %arg0, %c0_i32, %c0_i32_0 : i32, i32, i32
  }
}

</mosaic_0001>

<bundles_post_ra>
// kernel: tpu_custom_call.1
= control target key start
LH: loop header
LB: loop body
LE: loop exit
PB: predicated region body
PF: predicated region fallthrough
CT: control target
= control target key end

     0   :  { %s317_s0 = inlined_call_operand.vmem [shape: f32[2,128], index: 0, kind: input, shape index: {}]   ;;  %s318_s1 = inlined_call_operand.vmem [shape: f32[2,8], index: 1, kind: input, shape index: {}]   ;;  %s319_s2 = inlined_call_operand.vmem [shape: f32[128,8], index: 2, kind: input, shape index: {}]   ;;  %s320_s3 = inlined_call_operand.vmem [shape: f32[2,1024], index: 3, kind: input, shape index: {}]   ;;  %s321_s4 = inlined_call_operand.vmem [shape: f32[2,1024], index: 4, kind: input, shape index: {}]   ;;  %s322_s5 = inlined_call_operand.hbm [shape: f32[1,8,128], index: 5, kind: output, shape index: {}]  }
   0x1   :  { %v93_v0 = vld [vmem:[%s319_s2 + $0x78] sm:$0xff]  ;;  %v92_v1 = vld [vmem:[%s319_s2 + $0x70] sm:$0xff]  ;;  %v91_v2 = vld [vmem:[%s319_s2 + $0x68] sm:$0xff] }
   0x2   :  { %94 = vmatpush.msra.mxu0 %v93_v0  ;;  %v90_v3 = vld [vmem:[%s319_s2 + $0x60] sm:$0xff] }
   0x4   :  { %95 = vmatpush.msra.mxu0 %v92_v1 }
   0x6   :  { %96 = vmatpush.msra.mxu0 %v91_v2 }
   0x7   :  { %10 = vsyncpa [#allocation3], 0  ;;  %v89_v4 = vld [vmem:[%s319_s2 + $0x58] sm:$0xff]  ;;  %v88_v5 = vld [vmem:[%s319_s2 + $0x50] sm:$0xff]  ;;  %vm52_vm0 = vcmask 1041408   ;;  %vm135_vm3 = vcmask 58368  }
   0x8   :  { %97 = vmatpush.msra.mxu0 %v90_v3  ;;  %v87_v6 = vld [vmem:[%s319_s2 + $0x48] sm:$0xff]  ;;  %v86_v7 = vld [vmem:[%s319_s2 + $0x40] sm:$0xff]  ;;  %v85_v8 = vld [vmem:[%s319_s2 + $0x38] sm:$0xff]  ;;  %s209_s9 = smov [#allocation2]   ;;  %s166_s14 = sshll.u32 %s322_s5, 4  ;;  %s167_s14 = int_to_ptr.hbm [resolvable:$true] %s166_s14 }
   0x9   :  { %v84_v9 = vld [vmem:[%s319_s2 + $0x30] sm:$0xff]  ;;  %v83_v10 = vld [vmem:[%s319_s2 + $0x28] sm:$0xff]  ;;  %v82_v11 = vld [vmem:[%s319_s2 + $0x20] sm:$0xff]  ;;  %s164_s10 = sshll.u32 %s209_s9, 4  ;;  %s165_s10 = int_to_ptr.vmem [resolvable:$true] %s164_s10 }
   0xa   :  { %98 = vmatpush.msra.mxu0 %v89_v4  ;;  %v81_v12 = vld [vmem:[%s319_s2 + $0x18] sm:$0xff]  ;;  %v80_v13 = vld [vmem:[%s319_s2 + $0x10] sm:$0xff]  ;;  %v21_v14 = vld [vmem:[%s317_s0] sm:$0x3] }
   0xb   :  { %v79_v15 = vld [vmem:[%s319_s2 + $0x8] sm:$0xff]  ;;  %v78_v16 = vld [vmem:[%s319_s2] sm:$0xff]  ;;  %v77_v17 = vmul.f32 %v21_v14, %v21_v14 }
   0xc   :  { %99 = vmatpush.msra.mxu0 %v88_v5  ;;  %v23_v18 = vld [vmem:[%s321_s4] sm:$0xff]  ;;  %v24_v22 = vld [vmem:[%s321_s4 + $0x8] sm:$0xff] }
   0xd   :  { %v25_v19 = vld [vmem:[%s320_s3] sm:$0xff]  ;;  %v26_v23 = vld [vmem:[%s320_s3 + $0x8] sm:$0xff] }
   0xe   :  { %100 = vmatpush.msra.mxu0 %v87_v6  ;;  %v27_v20 = vsub.f32 %v23_v18, %v25_v19  ;;  %v28_v24 = vsub.f32 %v24_v22, %v26_v23  ;;  %v22_v55 = vld [vmem:[%s318_s1] sm:$0x3] }
   0xf   :  { %v131_v58 = vsub.f32 1.0, %v22_v55 }
  0x10   :  { %101 = vmatpush.msra.mxu0 %v86_v7  ;;  %v29_v21 = vmul.f32 %v27_v20, %v27_v20  ;;  %v30_v25 = vmul.f32 %v28_v24, %v28_v24 }
  0x11   :  { %v132_v0 = vmul.f32 0.5, %v131_v58 }
  0x12   :  { %102 = vmatpush.msra.mxu0 %v85_v8  ;;  %33 = vst [vmem:[#allocation1] ss:$4 sm:$0xff] %v29_v21  ;;  %v148_v21 = vlaneseq }
  0x13   :  { %35 = vst [vmem:[#allocation1 + $0x20] ss:$4 sm:$0xff] %v30_v25 }
  0x14   :  { %103 = vmatpush.msra.mxu0 %v84_v9  ;;  %v149_v22 = vshrl.u32 %v148_v21, 7  ;;  %v152_v23 = vand.u32 127, %v148_v21 }
  0x16   :  { %104 = vmatpush.msra.mxu0 %v83_v10  ;;  %vm150_vm4 = vcmp.eq.s32.totalorder %v149_v22, 0  ;;  %vm153_vm5 = vcmp.eq.s32.totalorder %v152_v23, 0 }
  0x17   :  { %vm154_vm6 = vmand %vm150_vm4, %vm153_vm5 }
  0x18   :  { %105 = vmatpush.msra.mxu0 %v82_v11 }
  0x19   :  { %v36_v26 = vld.sshfl [vmem:[#allocation1] sm:$0xff pattern:$0x73625140]  ;;  %v37_v27 = vld.sshfl [vmem:[#allocation1 + $0x8] sm:$0xff pattern:$0x73625140] }
  0x1a   :  { %106 = vmatpush.msra.mxu0 %v81_v12  ;;  %v38_v28 = vld.sshfl [vmem:[#allocation1 + $0x10] sm:$0xff pattern:$0x73625140]  ;;  %v53_v29 = vsel %vm52_vm0, %v36_v26, 0.0  ;;  %v54_v30 = vsel %vm52_vm0, %v37_v27, 0.0 }
  0x1b   :  { %v55_v31 = vadd.f32 %v54_v30, %v53_v29  ;;  %v56_v32 = vsel %vm52_vm0, %v38_v28, 0.0  ;;  %v39_v33 = vld.sshfl [vmem:[#allocation1 + $0x18] sm:$0xff pattern:$0x73625140] }
  0x1c   :  { %107 = vmatpush.msra.mxu0 %v80_v13  ;;  %v58_v35 = vsel %vm52_vm0, %v39_v33, 0.0  ;;  %v40_v36 = vld.sshfl [vmem:[#allocation1 + $0x20] sm:$0xff pattern:$0x73625140] }
  0x1d   :  { %v57_v34 = vadd.f32 %v56_v32, %v55_v31  ;;  %v60_v38 = vsel %vm52_vm0, %v40_v36, 0.0  ;;  %v41_v39 = vld.sshfl [vmem:[#allocation1 + $0x28] sm:$0xff pattern:$0x73625140] }
  0x1e   :  { %108 = vmatpush.msra.mxu0 %v79_v15  ;;  %v62_v41 = vsel %vm52_vm0, %v41_v39, 0.0  ;;  %v42_v42 = vld.sshfl [vmem:[#allocation1 + $0x30] sm:$0xff pattern:$0x73625140] }
  0x1f   :  { %v59_v37 = vadd.f32 %v58_v35, %v57_v34  ;;  %v64_v44 = vsel %vm52_vm0, %v42_v42, 0.0  ;;  %v43_v45 = vld.sshfl [vmem:[#allocation1 + $0x38] sm:$0xff pattern:$0x73625140] }
  0x20   :  { %109 = vmatpush.msra.mxu0 %v78_v16  ;;  %v66_v47 = vsel %vm52_vm0, %v43_v45, 0.0 }
  0x21   :  { %110 = vmatmul.f32.vlgmr.msra.gmra.mxu0 %v77_v17  ;;  %v61_v40 = vadd.f32 %v60_v38, %v59_v37 }
  0x23   :  { %v63_v43 = vadd.f32 %v62_v41, %v61_v40 }
  0x25   :  { %v65_v46 = vadd.f32 %v64_v44, %v63_v43 }
  0x27   :  { %v67_v48 = vadd.f32 %v66_v47, %v65_v46 }
  0x29   :  { %68 = vadd.xlane.f32.xlu0 %v67_v48 }
  0x9c   :  { %v69_v7 = vpop.xlane.xlu0 %68 }
  0x9d   :  { %v70_v8 = vrot.slane %v69_v7, 4 }
  0x9e   :  { %v111_v49 = vpop.f32.mrf.mxu0 }
  0x9f   :  { %181 = vrsqrt.f32 %v111_v49  ;;  %vm121_vm1 = vcmp.eq.f32.partialorder %v111_v49, inf  ;;  %v124_v59 = vand.u32 2147483648, %v111_v49  ;;  %vm123_vm2 = vcmp.eq.f32.partialorder %v111_v49, 0.0 }
  0xa0   :  { %v71_v9 = vadd.f32 %v70_v8, %v69_v7 }
  0xa2   :  { %v72_v10 = vrot.slane %v71_v9, 2 }
  0xa4   :  { %v73_v11 = vadd.f32 %v72_v10, %v71_v9 }
  0xa5   :  { %v182_v50 = vpop.eup %181 }
  0xa6   :  { %v115_v51 = vmul.f32 %v182_v50, %v111_v49  ;;  %v74_v12 = vrot.slane %v73_v11, 1 }
  0xa8   :  { %v116_v52 = vmul.f32 %v182_v50, %v115_v51  ;;  %v75_v13 = vadd.f32 %v74_v12, %v73_v11 }
  0xaa   :  { %v117_v53 = vmul.f32 0.5, %v116_v52  ;;  %176 = vpush %v75_v13 }
  0xac   :  { %v118_v54 = vsub.f32 1.5, %v117_v53 }
  0xae   :  { %v119_v56 = vmul.f32 %v182_v50, %v118_v54 }
  0xb0   :  { %v120_v57 = vmul.f32 %v119_v56, %v111_v49 }
  0xb2   :  { %v122_v60 = vsel %vm121_vm1, %v111_v49, %v120_v57 }
  0xb3   :  { %v125_v61 = vsel %vm123_vm2, %v124_v59, %v122_v60 }
  0xb4   :  { %v126_v62 = vsub.f32 0.9, %v125_v61  ;;  %v175_v63 = vadd.f32 -0.1, %v125_v61 }
  0xb6   :  { %v127_v1 = vmax.f32 %v126_v62, 0.0  ;;  %v129_v2 = vmax.f32 %v175_v63, 0.0 }
  0xb8   :  { %v130_v3 = vmul.f32 %v127_v1, %v22_v55  ;;  %v133_v4 = vmul.f32 %v132_v0, %v129_v2 }
  0xba   :  { %v134_v5 = vadd.f32 %v133_v4, %v130_v3 }
  0xbc   :  { %v136_v6 = vsel %vm135_vm3, %v134_v5, 0.0 }
  0xbd   :  { %137 = vadd.xlane.f32.xlu0 %v136_v6 }
  0xdb   :  { %s177_s1 = spop %176 }
  0xdc   :  { %s146_s8 = smul.f32 0.0005, %s177_s1 }
 0x130   :  { %v138_v14 = vpop.xlane.xlu0 %137 }
 0x131   :  { %v139_v15 = vrot.slane %v138_v14, 4 }
 0x133   :  { %v140_v16 = vadd.f32 %v139_v15, %v138_v14 }
 0x135   :  { %v141_v17 = vrot.slane %v140_v16, 2 }
 0x137   :  { %v142_v18 = vadd.f32 %v141_v17, %v140_v16 }
 0x139   :  { %v143_v19 = vrot.slane %v142_v18, 1 }
 0x13b   :  { %v144_v20 = vadd.f32 %v143_v19, %v142_v18 }
 0x13d   :  { %178 = vpush %v144_v20 }
 0x16e   :  { %s179_s11 = spop %178 }
 0x16f   :  { %s147_s15 = sadd.f32 %s179_s11, %s146_s8 }
 0x171   :  { %v155_v24 = vstv %s147_s15 }
 0x172   :  { %v156_v25 = vsel %vm154_vm6, %v155_v24, 0.0 }
 0x173   :  { %158 = vst [vmem:[#allocation2] sm:$0xff] %v156_v25 }
 0x174   :  { %169 = dma.vmem_to_hbm [thread:$0]  %s165_s10, 128, %s167_s14, [#allocation3]  }
 0x175   :  { %207 = dma.done.wait [#allocation3], 128  }
 0x176   :  { %208 = vsyncadd [#allocation3], 4294967168 }
 0x177   :  { %174 = vsyncpa [#allocation3], 1 }

</bundles_post_ra>
